<compile_context>
chip_gen: v6e
topology: v6e:2x2x1
jax: 0.10.0
libtpu: 0.0.40
codegen_flags: <defaults>
</compile_context>

<pallas_src>
import jax
import jax.numpy as jnp
from jax.experimental import pallas as pl
from jax.experimental.pallas import tpu as pltpu


# --------------------------------------------------------------------------- #
# Stage 1: xb = x @ B.T  ->  (M, rank), computed exactly once.                 #
# --------------------------------------------------------------------------- #
def _xb_kernel(x_ref, bt_ref, xb_ref, acc_ref):
    k = pl.program_id(1)

    @pl.when(k == 0)
    def _():
        acc_ref[...] = jnp.zeros_like(acc_ref)

    # (tm, tk) @ (tk, rank) -- canonical contraction, pre-transposed B.
    acc_ref[...] += jnp.dot(x_ref[...], bt_ref[...],
                            preferred_element_type=jnp.float32)

    @pl.when(k == pl.num_programs(1) - 1)
    def _():
        xb_ref[...] = acc_ref[...].astype(xb_ref.dtype)


# --------------------------------------------------------------------------- #
# Stage 2: y = x @ W0t + xb @ At + bias                                        #
# --------------------------------------------------------------------------- #
def _lora_kernel(xb_ref, x_ref, w0t_ref, at_ref, bias_ref, o_ref, acc_ref):
    k = pl.program_id(2)

    @pl.when(k == 0)
    def _():
        acc_ref[...] = jnp.zeros_like(acc_ref)

    # Base path: (tm, tk) @ (tk, tn), canonical contraction (W0 pre-transposed).
    acc_ref[...] += jnp.dot(x_ref[...], w0t_ref[...],
                            preferred_element_type=jnp.float32)

    @pl.when(k == pl.num_programs(2) - 1)
    def _():
        # LoRA epilogue: (tm, rank) @ (rank, tn), then bias, one dense store.
        y = acc_ref[...] + jnp.dot(xb_ref[...], at_ref[...],
                                   preferred_element_type=jnp.float32)
        o_ref[...] = (y + bias_ref[...]).astype(o_ref.dtype)


# --------------------------------------------------------------------------- #
# Tile selection helpers                                                       #
# --------------------------------------------------------------------------- #
def _pick_tm(m, preferred):
    """Adaptive M tile: never pad small/ragged M up to a full big tile."""
    if m >= preferred:
        cands = []
        for c in (preferred, 512, 256, 128, 64, 32, 16, 8):
            if c <= preferred and c not in cands:
                cands.append(c)
        for c in cands:
            padded = -(-m // c) * c
            if (padded - m) * 8 <= m:          # <= 12.5% padding waste
                return c
        return 8
    # Small M: a single row block, padded only to a sublane multiple of 8.
    return max(8, -(-m // 8) * 8)


def _pick_div_tile(dim, preferred):
    """Largest lane-friendly tile that divides dim, else the full extent."""
    for c in (preferred, 1024, 512, 256, 128):
        if c <= preferred and dim % c == 0:
            return c
    return dim


# --------------------------------------------------------------------------- #
# Wrapper                                                                      #
# --------------------------------------------------------------------------- #
def lora_forward(x, w0, a, b, bias, *, tm=512, tn=512, tk=1024,
                 compute_dtype=None):
    """x: (..., in_features) -> (..., out_features).

    w0: (out, in), a: (out, rank), b: (rank, in), bias: (out,).
    compute_dtype: optionally cast inputs (e.g. jnp.bfloat16); the f32
    accumulator is kept either way.
    """
    orig_shape = x.shape
    out_features, in_features = w0.shape
    rank = a.shape[1]

    if compute_dtype is not None:
        x = x.astype(compute_dtype)
        w0 = w0.astype(compute_dtype)
        a = a.astype(compute_dtype)
        b = b.astype(compute_dtype)

    x2d = x.reshape(-1, in_features)
    m = x2d.shape[0]
    dtype = x2d.dtype

    tm = _pick_tm(m, tm)
    tn = _pick_div_tile(out_features, tn)
    tk = _pick_div_tile(in_features, tk)

    m_pad = (-m) % tm
    if m_pad:
        x2d = jnp.pad(x2d, ((0, m_pad), (0, 0)))
    mp = m + m_pad

    # Pre-transpose static weights once (free for weights): canonical
    # ((1,),(0,)) contractions in-kernel, no per-tile layout change of tiles.
    w0t = jnp.transpose(w0)            # (in, out)
    at = jnp.transpose(a)              # (rank, out)
    bt = jnp.transpose(b)              # (in, rank)
    bias2d = bias.reshape(1, out_features).astype(jnp.float32)

    # ---- Stage 1: xb = x @ B.T  (M, rank), computed once ------------------ #
    xb = pl.pallas_call(
        _xb_kernel,
        out_shape=jax.ShapeDtypeStruct((mp, rank), dtype),
        grid_spec=pltpu.PrefetchScalarGridSpec(
            num_scalar_prefetch=0,
            grid=(mp // tm, in_features // tk),
            in_specs=[
                pl.BlockSpec((tm, tk), lambda i, k: (i, k)),       # x tile
                pl.BlockSpec((tk, rank), lambda i, k: (k, 0)),     # B.T tile
            ],
            out_specs=pl.BlockSpec((tm, rank), lambda i, k: (i, 0)),
            scratch_shapes=[pltpu.VMEM((tm, rank), jnp.float32)],
        ),
        compiler_params=pltpu.CompilerParams(
            dimension_semantics=("parallel", "arbitrary"),
        ),
    )(x2d, bt)

    # ---- Stage 2: y = x @ W0.T + xb @ A.T + bias -------------------------- #
    out = pl.pallas_call(
        _lora_kernel,
        out_shape=jax.ShapeDtypeStruct((mp, out_features), dtype),
        grid_spec=pltpu.PrefetchScalarGridSpec(
            num_scalar_prefetch=0,
            grid=(mp // tm, out_features // tn, in_features // tk),
            in_specs=[
                pl.BlockSpec((tm, rank), lambda i, j, k: (i, 0)),   # xb
                pl.BlockSpec((tm, tk), lambda i, j, k: (i, k)),     # x tile
                pl.BlockSpec((tk, tn), lambda i, j, k: (k, j)),     # W0.T tile
                pl.BlockSpec((rank, tn), lambda i, j, k: (0, j)),   # A.T tile
                pl.BlockSpec((1, tn), lambda i, j, k: (0, j)),      # bias tile
            ],
            out_specs=pl.BlockSpec((tm, tn), lambda i, j, k: (i, j)),
            scratch_shapes=[
                pltpu.VMEM((tm, tn), jnp.float32),   # f32 output accumulator
            ],
        ),
        compiler_params=pltpu.CompilerParams(
            # xb is an ordinary input (no cross-j scratch dependence), so both
            # i and j can be sharded across TensorCores on v7x.
            dimension_semantics=("parallel", "parallel", "arbitrary"),
            # ~6-11 MiB actual use at default tiles; 48 MiB is safe on v7x's
            # 64 MiB physical VMEM and leaves pipeline headroom on v5e/v6e.
            vmem_limit_bytes=48 * 1024 * 1024,
        ),
    )(xb, x2d, w0t, at, bias2d)

    if m_pad:
        out = out[:m]
    return out.reshape(*orig_shape[:-1], out_features)


if __name__ == "__main__":
    # Small shapes consistent with the module: Linear(in=32, out=32), rank=4,
    # input of shape (batch=2, seq=8, hidden=32).
    key = jax.random.PRNGKey(0)
    k_x, k_w0, k_a, k_b, k_bias = jax.random.split(key, 5)

    in_features, out_features, rank = 32, 32, 4
    x = jax.random.normal(k_x, (2, 8, in_features), dtype=jnp.float32)
    w0 = jax.random.normal(k_w0, (out_features, in_features), dtype=jnp.float32)
    a = jax.random.normal(k_a, (out_features, rank), dtype=jnp.float32)
    b = jax.random.normal(k_b, (rank, in_features), dtype=jnp.float32)
    bias = jax.random.normal(k_bias, (out_features,), dtype=jnp.float32)

    y = lora_forward(x, w0, a, b, bias)
    y = jax.block_until_ready(y)

    # Reference in plain JAX (same math as the PyTorch module), full f32.
    hi = jax.lax.Precision.HIGHEST
    w_ref = w0 + jnp.dot(a, b, precision=hi)
    y_ref = jnp.einsum("bsd,od->bso", x, w_ref, precision=hi) + bias

    assert y.shape == y_ref.shape
    max_err = float(jnp.max(jnp.abs(y - y_ref)))
    assert jnp.allclose(y, y_ref, atol=2e-2, rtol=2e-2), max_err

    print("KERNEL_OK")
</pallas_src>

<mosaic_0001>
module attributes {stable_mosaic.version = 11 : i64} {
  func.func @_xb_kernel(%arg0: i32, %arg1: i32, %arg2: memref<16x32xf32, #tpu.memory_space<vmem>>, %arg3: memref<32x4xf32, #tpu.memory_space<vmem>>, %arg4: memref<16x4xf32, #tpu.memory_space<vmem>>, %arg5: memref<16x4xf32, #tpu.memory_space<vmem>>) attributes {dimension_semantics = [#tpu.dimension_semantics<parallel>, #tpu.dimension_semantics<arbitrary>], iteration_bounds = array<i64: 1, 1>, scalar_prefetch = 0 : i64, scratch_operands = 1 : i64, tpu.core_type = #tpu.core_type<tc>, window_params = [{transform_indices = @transform_0, window_bounds = array<i64: 16, 32>}, {transform_indices = @transform_1, window_bounds = array<i64: 32, 4>}, {transform_indices = @transform_2, window_bounds = array<i64: 16, 4>}]} {
    %c0_i32 = arith.constant 0 : i32
    %0 = arith.cmpi eq, %arg1, %c0_i32 : i32
    %1 = arith.extui %0 : i1 to i32
    %c0_i32_0 = arith.constant 0 : i32
    %2 = arith.cmpi ne, %1, %c0_i32_0 : i32
    scf.if %2 {
      %cst_10 = arith.constant 0.000000e+00 : f32
      %12 = vector.broadcast %cst_10 : f32 to vector<16x4xf32>
      %c0_11 = arith.constant 0 : index
      %c0_12 = arith.constant 0 : index
      %13 = vector.load %arg5[%c0_11, %c0_12] : memref<16x4xf32, #tpu.memory_space<vmem>>, vector<16x4xf32>
      tpu.vector_store %arg5[%c0_11, %c0_12], %12 {strides = array<i32>} : memref<16x4xf32, #tpu.memory_space<vmem>>, vector<16x4xf32>,
    } else {
    }
    %c0 = arith.constant 0 : index
    %c0_1 = arith.constant 0 : index
    %3 = vector.load %arg5[%c0, %c0_1] : memref<16x4xf32, #tpu.memory_space<vmem>>, vector<16x4xf32>
    %c0_2 = arith.constant 0 : index
    %c0_3 = arith.constant 0 : index
    %4 = vector.load %arg2[%c0_2, %c0_3] : memref<16x32xf32, #tpu.memory_space<vmem>>, vector<16x32xf32>
    %c0_4 = arith.constant 0 : index
    %c0_5 = arith.constant 0 : index
    %5 = vector.load %arg3[%c0_4, %c0_5] : memref<32x4xf32, #tpu.memory_space<vmem>>, vector<32x4xf32>
    %cst = arith.constant dense<0.000000e+00> : vector<16x4xf32>
    %6 = tpu.matmul %4, %5, %cst {dimension_numbers = #tpu.dot_dimension_numbers<[1], [0], [0], [1], [0, 0, 1, 1], [], []>} : vector<16x32xf32>, vector<32x4xf32>, vector<16x4xf32> -> vector<16x4xf32>
    %7 = arith.addf %3, %6 : vector<16x4xf32>
    %c0_6 = arith.constant 0 : index
    %c0_7 = arith.constant 0 : index
    %8 = vector.load %arg5[%c0_6, %c0_7] : memref<16x4xf32, #tpu.memory_space<vmem>>, vector<16x4xf32>
    tpu.vector_store %arg5[%c0_6, %c0_7], %7 {strides = array<i32>} : memref<16x4xf32, #tpu.memory_space<vmem>>, vector<16x4xf32>,
    %c0_i32_8 = arith.constant 0 : i32
    %9 = arith.cmpi eq, %arg1, %c0_i32_8 : i32
    %10 = arith.extui %9 : i1 to i32
    %c0_i32_9 = arith.constant 0 : i32
    %11 = arith.cmpi ne, %10, %c0_i32_9 : i32
    scf.if %11 {
      %c0_10 = arith.constant 0 : index
      %c0_11 = arith.constant 0 : index
      %12 = vector.load %arg5[%c0_10, %c0_11] : memref<16x4xf32, #tpu.memory_space<vmem>>, vector<16x4xf32>
      %c0_12 = arith.constant 0 : index
      %c0_13 = arith.constant 0 : index
      %13 = vector.load %arg4[%c0_12, %c0_13] : memref<16x4xf32, #tpu.memory_space<vmem>>, vector<16x4xf32>
      tpu.vector_store %arg4[%c0_12, %c0_13], %12 {strides = array<i32>} : memref<16x4xf32, #tpu.memory_space<vmem>>, vector<16x4xf32>,
    } else {
    }
    return
  }
  func.func @transform_0(%arg0: i32, %arg1: i32) -> (i32, i32) {
    %c0_i32 = arith.constant 0 : i32
    return %arg0, %arg1 : i32, i32
  }
  func.func @transform_1(%arg0: i32, %arg1: i32) -> (i32, i32) {
    %c0_i32 = arith.constant 0 : i32
    %c0_i32_0 = arith.constant 0 : i32
    return %arg1, %c0_i32 : i32, i32
  }
  func.func @transform_2(%arg0: i32, %arg1: i32) -> (i32, i32) {
    %c0_i32 = arith.constant 0 : i32
    %c0_i32_0 = arith.constant 0 : i32
    return %arg0, %c0_i32 : i32, i32
  }
}

</mosaic_0001>

<bundles_post_ra>
// kernel: tpu_custom_call.1
= control target key start
LH: loop header
LB: loop body
LE: loop exit
PB: predicated region body
PF: predicated region fallthrough
CT: control target
= control target key end

     0   :  { %vm26_vm0 = vcmask 261120   ;;  %vm15_vm1 = vcmask 31744   ;;  %v144_v2 = vmov 0.0   ;;  %s192_s1 = inlined_call_operand.vmem [shape: f32[32,4], index: 1, kind: input, shape index: {}]   ;;  %s193_s0 = inlined_call_operand.vmem [shape: f32[16,32], index: 0, kind: input, shape index: {}]   ;;  %s194_s2 = inlined_call_operand.vmem [shape: f32[16,4], index: 2, kind: output, shape index: {}]  }
   0x1   :  { %v25_v0 = vld [vmem:[%s192_s1 + $0x18] sm:$0xff]  ;;  %v24_v1 = vld [vmem:[%s192_s1 + $0x10] sm:$0xff]  ;;  %17 = vst.msk [vmem:[#allocation2 + $0x8] sm:$0xff] %vm15_vm1, %v144_v2  ;;  %16 = vst.msk [vmem:[#allocation2] sm:$0xff] %vm15_vm1, %v144_v2 }
   0x2   :  { %132 = vmatprep.subr.mxu0 %v25_v0  ;;  %v20_v3 = vld [vmem:[%s193_s0] sm:$0xff]  ;;  %v23_v4 = vld [vmem:[%s192_s1 + $0x8] sm:$0xff] }
   0x3   :  { %133 = vmatpush3.msra.mxu0 %v25_v0  ;;  %140 = vmatprep.mubr.msk.f32.mxu0 %vm26_vm0, %v20_v3  ;;  %v22_v5 = vld [vmem:[%s192_s1] sm:$0xff]  ;;  %v21_v6 = vld [vmem:[%s193_s0 + $0x8] sm:$0xff] }
   0x4   :  { %134 = vmatprep.subr.mxu0 %v24_v1 }
   0x5   :  { %135 = vmatpush3.msra.mxu0 %v24_v1 }
   0x6   :  { %136 = vmatprep.subr.mxu0 %v23_v4 }
   0x7   :  { %137 = vmatpush3.msra.mxu0 %v23_v4 }
   0x8   :  { %138 = vmatprep.subr.mxu0 %v22_v5  ;;  %v19_v7 = vld [vmem:[#allocation2 + $0x8] sm:$0xff]  ;;  %v18_v9 = vld [vmem:[#allocation2] sm:$0xff] }
   0x9   :  { %139 = vmatpush3.msra.mxu0 %v22_v5 }
   0xa   :  { %141 = vmatmul.mubr.msk.f32.vlgmr.msra.gmra.mxu0 %vm26_vm0, %v21_v6 }
  0xca   :  { %v142_v8 = vpop.f32.mrf.mxu0 }
  0xcb   :  { %v109_v10 = vadd.f32 %v142_v8, %v19_v7 }
  0xcc   :  { %v99_v11 = vpop.f32.mrf.mxu0 }
  0xcd   :  { %112 = vst.msk [vmem:[#allocation2 + $0x8] sm:$0xff] %vm15_vm1, %v109_v10  ;;  %v108_v12 = vadd.f32 %v99_v11, %v18_v9 }
  0xcf   :  { %111 = vst.msk [vmem:[#allocation2] sm:$0xff] %vm15_vm1, %v108_v12 }
  0xd4   :  { %v117_v13 = vld [vmem:[#allocation2 + $0x8] sm:$0xff] }
  0xd5   :  { %119 = vst.msk [vmem:[%s194_s2 + $0x8] sm:$0xff] %vm15_vm1, %v117_v13 }
  0xd6   :  { %v116_v14 = vld [vmem:[#allocation2] sm:$0xff] }
  0xd7   :  { %118 = vst.msk [vmem:[%s194_s2] sm:$0xff] %vm15_vm1, %v116_v14 }

</bundles_post_ra>
